<compile_context>
chip_gen: v7x
topology: tpu7x:2x2x1
jax: 0.10.0
libtpu: 0.0.40
codegen_flags: <defaults>
</compile_context>

<pallas_src>
import functools

import jax
import jax.numpy as jnp
from jax import lax
from jax.experimental import pallas as pl
from jax.experimental.pallas import tpu as pltpu


_LANE = 128  # lane width; HW is padded to a multiple of this.


def _channel_attention_kernel(x_ref, w1_ref, w2_ref, o_ref, *, hw, block_b):
    # x_ref : (block_b, C, HWp)  current batch slab (HWp = lane-padded H*W)
    # w1_ref: (Cr, C)            fc[0].weight (out, in), 1x1 conv, no bias
    # w2_ref: (C, Cr)            fc[2].weight (out, in), 1x1 conv, no bias
    C = x_ref.shape[1]
    hwp = x_ref.shape[2]
    n_chunks = hwp // _LANE
    needs_mask = hwp != hw
    unroll = n_chunks <= 8

    w1 = w1_ref[...]
    w2 = w2_ref[...]
    inv_hw = jnp.float32(1.0 / hw)

    # ---- Phase 1: pooling (VALU accumulate per chunk, one XLU reduce) ----
    pooled_cols = []
    for t in range(block_b):  # static, small
        def pool_body(j, carry, t=t):
            s_acc, m_acc = carry
            off = pl.multiple_of(j * _LANE, _LANE)
            xs = x_ref[t, :, pl.ds(off, _LANE)].astype(jnp.float32)
            if needs_mask:
                lane = lax.broadcasted_iota(jnp.int32, (C, _LANE), 1) + off
                xs_max = jnp.where(lane < hw, xs, -jnp.inf)
            else:
                xs_max = xs
            # zero lane-padding keeps the sum exact without masking
            return s_acc + xs, jnp.maximum(m_acc, xs_max)

        s_acc, m_acc = lax.fori_loop(
            0, n_chunks, pool_body,
            (jnp.zeros((C, _LANE), jnp.float32),
             jnp.full((C, _LANE), -jnp.inf, jnp.float32)),
            unroll=unroll)
        avg = jnp.sum(s_acc, axis=-1, keepdims=True) * inv_hw   # (C, 1)
        mx = jnp.max(m_acc, axis=-1, keepdims=True)             # (C, 1)
        pooled_cols.append(avg)
        pooled_cols.append(mx)

    # ---- Phase 2: shared MLP, fused over {avg, max} x block_b columns ----
    v = jnp.concatenate(pooled_cols, axis=-1)                   # (C, 2*block_b)
    h = jnp.maximum(jnp.dot(w1, v, preferred_element_type=jnp.float32), 0.0)
    y = jnp.dot(w2, h, preferred_element_type=jnp.float32)      # (C, 2*block_b)

    # ---- Phase 3: apply gate, streaming chunk-by-chunk, lane-dense stores ----
    for t in range(block_b):
        attn = jax.nn.sigmoid(
            y[:, 2 * t:2 * t + 1] + y[:, 2 * t + 1:2 * t + 2])  # (C, 1)

        def apply_body(j, carry, t=t, attn=attn):
            off = pl.multiple_of(j * _LANE, _LANE)
            xs = x_ref[t, :, pl.ds(off, _LANE)].astype(jnp.float32)
            o_ref[t, :, pl.ds(off, _LANE)] = (xs * attn).astype(o_ref.dtype)
            return carry

        lax.fori_loop(0, n_chunks, apply_body, 0, unroll=unroll)


def _pick_block_b(batch, per_elem_bytes, vmem_budget=8 * 1024 * 1024):
    """Largest divisor of `batch` whose double-buffered in+out slab fits the
    budget while keeping >= ~8 grid steps for pipelining / megacore."""
    cap = max(1, min(batch // 8, vmem_budget // max(1, 4 * per_elem_bytes)))
    for d in range(min(batch, cap), 0, -1):
        if batch % d == 0:
            return d
    return 1


def channel_attention(x_nchw, w1, w2):
    """x_nchw: (B, C, H, W); w1: (C//r, C); w2: (C, C//r)."""
    B, C, H, W = x_nchw.shape
    HW = H * W
    HWp = pl.cdiv(HW, _LANE) * _LANE

    x = x_nchw.reshape(B, C, HW)
    if HWp != HW:
        # Zero lane-padding keeps the output stores unmasked (lane-dense);
        # padded lanes are masked for max-pool in-kernel and sliced off below.
        x = jnp.pad(x, ((0, 0), (0, 0), (0, HWp - HW)))

    itemsize = x.dtype.itemsize
    block_b = _pick_block_b(B, C * HWp * itemsize)
    # TODO(synk): for blocks where C*HWp*itemsize exceeds ~8 MiB (v7x's 64 MiB
    # VMEM), split the apply phase over an extra HW grid axis instead of
    # holding a whole element resident.

    # Explicit scoped-VMEM budget: double-buffered input + output slabs + weights.
    block_bytes = block_b * C * HWp * itemsize
    w_bytes = (w1.size + w2.size) * w1.dtype.itemsize
    vmem_limit = int(min(64 << 20,
                         max(16 << 20, 4 * block_bytes + 2 * w_bytes + (2 << 20))))

    Cr = w1.shape[0]
    kernel = functools.partial(_channel_attention_kernel, hw=HW, block_b=block_b)

    out = pl.pallas_call(
        kernel,
        out_shape=jax.ShapeDtypeStruct((B, C, HWp), x.dtype),
        grid_spec=pltpu.PrefetchScalarGridSpec(
            num_scalar_prefetch=0,
            grid=(B // block_b,),
            in_specs=[
                pl.BlockSpec((block_b, C, HWp), lambda b: (b, 0, 0)),
                pl.BlockSpec(w1.shape, lambda b: (0, 0)),
                pl.BlockSpec(w2.shape, lambda b: (0, 0)),
            ],
            out_specs=pl.BlockSpec((block_b, C, HWp), lambda b: (b, 0, 0)),
        ),
        compiler_params=pltpu.CompilerParams(
            dimension_semantics=("parallel",),
            vmem_limit_bytes=vmem_limit,
        ),
        cost_estimate=pl.CostEstimate(
            flops=int(3 * B * C * HW + 8 * B * C * Cr),
            transcendentals=int(B * C),
            bytes_accessed=int(2 * B * C * HW * itemsize + 2 * w_bytes),
        ),
    )(x, w1, w2)

    if HWp != HW:
        out = out[:, :, :HW]
    return out.reshape(B, C, H, W)


def _reference(x, w1, w2):
    # Pure-JAX reference matching the PyTorch forward.
    avg = jnp.mean(x, axis=(2, 3))                  # (B, C)
    mx = jnp.max(x, axis=(2, 3))                    # (B, C)

    def fc(v):
        return jnp.maximum(v @ w1.T, 0.0) @ w2.T

    attn = jax.nn.sigmoid(fc(avg) + fc(mx))         # (B, C)
    return x * attn[:, :, None, None]


if __name__ == "__main__":
    key = jax.random.PRNGKey(0)

    # Case 1: module-spec shape (no lane padding, block_b = 1).
    B, C, H, W = 2, 64, 16, 16
    Cr = C // 16
    kx, k1, k2, key = jax.random.split(key, 4)
    x = jax.random.normal(kx, (B, C, H, W), dtype=jnp.float32)
    w1 = jax.random.normal(k1, (Cr, C), dtype=jnp.float32) * 0.1   # fc[0].weight
    w2 = jax.random.normal(k2, (C, Cr), dtype=jnp.float32) * 0.1   # fc[2].weight
    out = jax.block_until_ready(channel_attention(x, w1, w2))
    ref = _reference(x, w1, w2)
    assert out.shape == x.shape and out.dtype == x.dtype
    assert jnp.allclose(out, ref, atol=1e-5, rtol=1e-5), (
        float(jnp.max(jnp.abs(out - ref))))

    # Case 2: exercises lane padding (HW=64 -> 128) and block_b=2 batching.
    B2, C2, H2, W2 = 16, 64, 8, 8
    Cr2 = C2 // 16
    kx, k1, k2, key = jax.random.split(key, 4)
    x2 = jax.random.normal(kx, (B2, C2, H2, W2), dtype=jnp.float32)
    w1b = jax.random.normal(k1, (Cr2, C2), dtype=jnp.float32) * 0.1
    w2b = jax.random.normal(k2, (C2, Cr2), dtype=jnp.float32) * 0.1
    out2 = jax.block_until_ready(channel_attention(x2, w1b, w2b))
    ref2 = _reference(x2, w1b, w2b)
    assert jnp.allclose(out2, ref2, atol=1e-5, rtol=1e-5), (
        float(jnp.max(jnp.abs(out2 - ref2))))

    print("KERNEL_OK")
</pallas_src>

<mosaic_0001>
module attributes {stable_mosaic.version = 11 : i64} {
  func.func @_channel_attention_kernel(%arg0: i32, %arg1: memref<1x64x256xf32, #tpu.memory_space<vmem>>, %arg2: memref<4x64xf32, #tpu.memory_space<vmem>>, %arg3: memref<64x4xf32, #tpu.memory_space<vmem>>, %arg4: memref<1x64x256xf32, #tpu.memory_space<vmem>>) attributes {dimension_semantics = [#tpu.dimension_semantics<parallel>], iteration_bounds = array<i64: 2>, scalar_prefetch = 0 : i64, scratch_operands = 0 : i64, tpu.core_type = #tpu.core_type<tc>, window_params = [{transform_indices = @transform_0, window_bounds = array<i64: 1, 64, 256>}, {pipeline_mode = #tpu.pipeline_mode<synchronous>, transform_indices = @transform_1, window_bounds = array<i64: 4, 64>}, {pipeline_mode = #tpu.pipeline_mode<synchronous>, transform_indices = @transform_2, window_bounds = array<i64: 64, 4>}, {transform_indices = @transform_3, window_bounds = array<i64: 1, 64, 256>}]} {
    %c0 = arith.constant 0 : index
    %c0_0 = arith.constant 0 : index
    %0 = vector.load %arg2[%c0, %c0_0] : memref<4x64xf32, #tpu.memory_space<vmem>>, vector<4x64xf32>
    %c0_1 = arith.constant 0 : index
    %c0_2 = arith.constant 0 : index
    %1 = vector.load %arg3[%c0_1, %c0_2] : memref<64x4xf32, #tpu.memory_space<vmem>>, vector<64x4xf32>
    %cst = arith.constant 0.000000e+00 : f32
    %2 = vector.broadcast %cst : f32 to vector<64x128xf32>
    %cst_3 = arith.constant 0xFF800000 : f32
    %3 = vector.broadcast %cst_3 : f32 to vector<64x128xf32>
    %c0_i32 = arith.constant 0 : i32
    %c128_i32 = arith.constant 128 : i32
    %4 = arith.muli %c0_i32, %c128_i32 : i32
    %5 = tpu.assume_multiple %4, 128 : i32
    %c0_4 = arith.constant 0 : index
    %c0_5 = arith.constant 0 : index
    %6 = arith.index_cast %5 : i32 to index
    %7 = vector.load %arg1[%c0_4, %c0_5, %6] : memref<1x64x256xf32, #tpu.memory_space<vmem>>, vector<1x64x128xf32>
    %8 = vector.shape_cast %7 : vector<1x64x128xf32> to vector<64x128xf32>
    %9 = arith.addf %2, %8 : vector<64x128xf32>
    %10 = arith.maximumf %3, %8 : vector<64x128xf32>
    %c1_i32 = arith.constant 1 : i32
    %c128_i32_6 = arith.constant 128 : i32
    %11 = arith.muli %c1_i32, %c128_i32_6 : i32
    %12 = tpu.assume_multiple %11, 128 : i32
    %c0_7 = arith.constant 0 : index
    %c0_8 = arith.constant 0 : index
    %13 = arith.index_cast %12 : i32 to index
    %14 = vector.load %arg1[%c0_7, %c0_8, %13] : memref<1x64x256xf32, #tpu.memory_space<vmem>>, vector<1x64x128xf32>
    %15 = vector.shape_cast %14 : vector<1x64x128xf32> to vector<64x128xf32>
    %16 = arith.addf %9, %15 : vector<64x128xf32>
    %17 = arith.maximumf %10, %15 : vector<64x128xf32>
    %c2_i32 = arith.constant 2 : i32
    %cst_9 = arith.constant dense<0.000000e+00> : vector<64xf32>
    %18 = vector.multi_reduction <add>, %16, %cst_9 [1] : vector<64x128xf32> to vector<64xf32>
    %19 = vector.shape_cast %18 : vector<64xf32> to vector<64x1xf32>
    %cst_10 = arith.constant 3.906250e-03 : f32
    %20 = vector.broadcast %cst_10 : f32 to vector<64x1xf32>
    %21 = arith.mulf %19, %20 : vector<64x1xf32>
    %cst_11 = arith.constant dense<0xFF800000> : vector<64xf32>
    %22 = vector.multi_reduction <maximumf>, %17, %cst_11 [1] : vector<64x128xf32> to vector<64xf32>
    %23 = vector.shape_cast %22 : vector<64xf32> to vector<64x1xf32>
    %24 = tpu.concatenate %21, %23 in 1 : vector<64x1xf32>, vector<64x1xf32> -> vector<64x2xf32>
    %cst_12 = arith.constant dense<0.000000e+00> : vector<4x2xf32>
    %25 = tpu.matmul %0, %24, %cst_12 {dimension_numbers = #tpu.dot_dimension_numbers<[1], [0], [0], [1], [0, 0, 1, 1], [], []>} : vector<4x64xf32>, vector<64x2xf32>, vector<4x2xf32> -> vector<4x2xf32>
    %cst_13 = arith.constant 0.000000e+00 : f32
    %26 = vector.broadcast %cst_13 : f32 to vector<4x2xf32>
    %27 = arith.maximumf %25, %26 : vector<4x2xf32>
    %cst_14 = arith.constant dense<0.000000e+00> : vector<64x2xf32>
    %28 = tpu.matmul %1, %27, %cst_14 {dimension_numbers = #tpu.dot_dimension_numbers<[1], [0], [0], [1], [0, 0, 1, 1], [], []>} : vector<64x4xf32>, vector<4x2xf32>, vector<64x2xf32> -> vector<64x2xf32>
    %29 = vector.extract_strided_slice %28 {offsets = [0, 0], sizes = [64, 1], strides = [1, 1]} : vector<64x2xf32> to vector<64x1xf32>
    %30 = vector.extract_strided_slice %28 {offsets = [0, 1], sizes = [64, 1], strides = [1, 1]} : vector<64x2xf32> to vector<64x1xf32>
    %31 = arith.addf %29, %30 : vector<64x1xf32>
    %32 = arith.negf %31 : vector<64x1xf32>
    %33 = math.exp %32 : vector<64x1xf32>
    %cst_15 = arith.constant 1.000000e+00 : f32
    %34 = vector.broadcast %cst_15 : f32 to vector<64x1xf32>
    %35 = arith.addf %34, %33 : vector<64x1xf32>
    %36 = arith.divf %34, %35 : vector<64x1xf32>
    %c0_i32_16 = arith.constant 0 : i32
    %c128_i32_17 = arith.constant 128 : i32
    %37 = arith.muli %c0_i32_16, %c128_i32_17 : i32
    %38 = tpu.assume_multiple %37, 128 : i32
    %c0_18 = arith.constant 0 : index
    %c0_19 = arith.constant 0 : index
    %39 = arith.index_cast %38 : i32 to index
    %40 = vector.load %arg1[%c0_18, %c0_19, %39] : memref<1x64x256xf32, #tpu.memory_space<vmem>>, vector<1x64x128xf32>
    %41 = vector.shape_cast %40 : vector<1x64x128xf32> to vector<64x128xf32>
    %42 = vector.broadcast %36 : vector<64x1xf32> to vector<64x128xf32>
    %43 = arith.mulf %41, %42 : vector<64x128xf32>
    %c0_20 = arith.constant 0 : index
    %c0_21 = arith.constant 0 : index
    %44 = arith.index_cast %38 : i32 to index
    %45 = vector.load %arg4[%c0_20, %c0_21, %44] : memref<1x64x256xf32, #tpu.memory_space<vmem>>, vector<1x64x128xf32>
    %46 = vector.shape_cast %45 : vector<1x64x128xf32> to vector<64x128xf32>
    %47 = vector.shape_cast %43 : vector<64x128xf32> to vector<1x64x128xf32>
    tpu.vector_store %arg4[%c0_20, %c0_21, %44], %47 {strides = array<i32>} : memref<1x64x256xf32, #tpu.memory_space<vmem>>, vector<1x64x128xf32>,
    %c1_i32_22 = arith.constant 1 : i32
    %c128_i32_23 = arith.constant 128 : i32
    %48 = arith.muli %c1_i32_22, %c128_i32_23 : i32
    %49 = tpu.assume_multiple %48, 128 : i32
    %c0_24 = arith.constant 0 : index
    %c0_25 = arith.constant 0 : index
    %50 = arith.index_cast %49 : i32 to index
    %51 = vector.load %arg1[%c0_24, %c0_25, %50] : memref<1x64x256xf32, #tpu.memory_space<vmem>>, vector<1x64x128xf32>
    %52 = vector.shape_cast %51 : vector<1x64x128xf32> to vector<64x128xf32>
    %53 = vector.broadcast %36 : vector<64x1xf32> to vector<64x128xf32>
    %54 = arith.mulf %52, %53 : vector<64x128xf32>
    %c0_26 = arith.constant 0 : index
    %c0_27 = arith.constant 0 : index
    %55 = arith.index_cast %49 : i32 to index
    %56 = vector.load %arg4[%c0_26, %c0_27, %55] : memref<1x64x256xf32, #tpu.memory_space<vmem>>, vector<1x64x128xf32>
    %57 = vector.shape_cast %56 : vector<1x64x128xf32> to vector<64x128xf32>
    %58 = vector.shape_cast %54 : vector<64x128xf32> to vector<1x64x128xf32>
    tpu.vector_store %arg4[%c0_26, %c0_27, %55], %58 {strides = array<i32>} : memref<1x64x256xf32, #tpu.memory_space<vmem>>, vector<1x64x128xf32>,
    %c2_i32_28 = arith.constant 2 : i32
    return
  }
  func.func @transform_0(%arg0: i32) -> (i32, i32, i32) {
    %c0_i32 = arith.constant 0 : i32
    %c0_i32_0 = arith.constant 0 : i32
    %c0_i32_1 = arith.constant 0 : i32
    return %arg0, %c0_i32, %c0_i32_0 : i32, i32, i32
  }
  func.func @transform_1(%arg0: i32) -> (i32, i32) {
    %c0_i32 = arith.constant 0 : i32
    %c0_i32_0 = arith.constant 0 : i32
    %c0_i32_1 = arith.constant 0 : i32
    return %c0_i32, %c0_i32_0 : i32, i32
  }
  func.func @transform_2(%arg0: i32) -> (i32, i32) {
    %c0_i32 = arith.constant 0 : i32
    %c0_i32_0 = arith.constant 0 : i32
    %c0_i32_1 = arith.constant 0 : i32
    return %c0_i32, %c0_i32_0 : i32, i32
  }
  func.func @transform_3(%arg0: i32) -> (i32, i32, i32) {
    %c0_i32 = arith.constant 0 : i32
    %c0_i32_0 = arith.constant 0 : i32
    %c0_i32_1 = arith.constant 0 : i32
    return %arg0, %c0_i32, %c0_i32_0 : i32, i32, i32
  }
}

</mosaic_0001>

<bundles_post_ra>
// kernel: tpu_custom_call.1
= control target key start
LH: loop header
LB: loop body
LE: loop exit
PB: predicated region body
PF: predicated region fallthrough
CT: control target
= control target key end

     0   :  { %8 = vsyncpa [#allocation3], 0  ;;  %s1418_s0 = inlined_call_operand.hbm [shape: f32[2,64,256], index: 0, kind: input, shape index: {}]   ;;  %s1419_s1 = inlined_call_operand.vmem [shape: f32[4,64], index: 1, kind: input, shape index: {}]   ;;  %s1420_s2 = inlined_call_operand.vmem [shape: f32[64,4], index: 2, kind: input, shape index: {}]   ;;  %s1421_s3 = inlined_call_operand.hbm [shape: f32[2,64,256], index: 3, kind: output, shape index: {}]  }
   0x1   :  { %10 = vsyncpa [#allocation3 + $0x1], 0 }
   0x2   :  { %11 = vsyncpa [#allocation4], 0 }
   0x3   :  { %13 = vsyncpa [#allocation4 + $0x1], 0  ;;  %s1092_s12 = smov 0   ;;  %s1094_s13 = smov 0  }
   0x4   :  { %s1096_s14 = smov 0   ;;  %s1098_s15 = smov 0  }
   0x5 LB: > { %s1113_s16 = sadd.s32 4294967295, %s1059_s15   ;;  %s753_s17 = sadd.s32 4294967294, %s1059_s15   ;;  %s1059_s15 = sphi %s1098_s15, %s1434_s15   ;;  %s1055_s14 = sphi %s1096_s14, %s1433_s14   ;;  %s1051_s13 = sphi %s1094_s13, %s1432_s13   ;;  %s1047_s12 = sphi %s1092_s12, %s1431_s12  }
   0x6   : > { %s1117_s18 = sadd.s32 1, %s1059_s15   ;;  %s26_s19 = sadd.s32 1, %s1055_s14 }
   0x7   : > { %s23_s20 = ssub.s32 %s1059_s15, %s1117_s18  ;;  %p33_p0 = scmp.ne.s32.totalorder %s1055_s14, %s1051_s13 }
   0x8   : > { %p24_p1 = scmp.eq.s32.totalorder %s23_s20, 0  ;;  %p34_p2 = scmp.eq.s32.totalorder %s1059_s15, 0 }
   0x9   : > { %p39_p3 = scmp.ne.s32.totalorder %s1051_s13, %s1047_s12  ;;  %p40_p4 = scmp.eq.s32.totalorder %s1113_s16, 0 }
   0xa   : > { %s1129_s21 = scalar_select %p24_p1, %s1055_s14, %s26_s19  }
   0xb   : > { %p1131_p5 = por %p34_p2, %p33_p0  ;;  %p1135_p6 = por %p40_p4, %p39_p3 }
   0xc   : > { %p105_p7 = scmp.eq.s32.totalorder %s1113_s16, 1  ;;  %p111_p8 = scmp.eq.s32.totalorder %s753_s17, 1 }
   0xd   : > { %p886_p10 = scmp.lt.s32.totalorder %s1059_s15, 2  ;;  %s137_s26 = sand.u32 1, %s1055_s14  }
   0xe   : > { %p1142_p11 = por %p105_p7, %p33_p0  ;;  %p1146_p12 = por %p111_p8, %p39_p3 }
   0xf   : > { %s809_s27 = sshll.u32 %s1059_s15, 11  ;;  %s756_s28 = sshll.u32 %s137_s26, 7 }
  0x10   : > { %s1425_s24 = scalar_select %p1142_p11, 1, 0 }
  0x11   : > { %s1426_s25 = scalar_select %p1146_p12, 1, 0 }
  0x12   : > { %s1155_s4 = scalar_lea.hbm %s1418_s0, %s809_s27  ;;  %s141_s5 = scalar_lea.vmem [#allocation2], %s756_s28 }
  0x13   : > { %s148_s6 = sshll.u32 %s141_s5, 4  ;;  %p1159_p13 = pnand %p886_p10, %p1131_p5  ;;  %s1163_s6 = int_to_ptr.vmem [resolvable:$true] %s148_s6 }
  0x14   : > { %s1165_s8 = scalar_lea.sflag [#allocation3], %s137_s26  ;;  %s963_s9 = scalar_lea.hbm %s1155_s4, 2048 }
  0x15   : > { %p964_p0 = scmp.ne.s32.totalorder %s1155_s4, %s963_s9  ;;  %p965_p1 = pneg %p1159_p13 }
  0x16   : > { %s968_s17 = scalar_lea.hbm %s1418_s0, 4096  ;;  %p969_p4 = scmp.lt.u32.totalorder %s1155_s4, %s1418_s0 }
  0x17   : > { %p966_p2 = pnand %p965_p1, %p964_p0  ;;  %p970_p5 = scmp.lt.u32.totalorder %s968_s17, %s963_s9 }
  0x18   : > { %p972_p8 = scmp.lt.u32.totalorder %s963_s9, %s1155_s4 }
  0x19   : > { %p967_p3 = pneg %p966_p2  ;;  %p971_p7 = por %p970_p5, %p969_p4 }
  0x1b   : > { %p973_p10 = por %p972_p8, %p971_p7 }
  0x1d   : > { %p974_p9 = pnand %p973_p10, %p967_p3 }
  0x1f   : > { %977 = shalt.err (!%p974_p9)
}
  0x20   : > { %s978_s22 = scalar_lea.vmem %s1163_s6, 2048  ;;  %s1061_s26 = smov [#allocation2]  }
  0x21   : > { %p979_p0 = scmp.ne.s32.totalorder %s1163_s6, %s978_s22  ;;  %s983_s27 = sshll.u32 %s1061_s26, 4  ;;  %s984_s27 = int_to_ptr.vmem [resolvable:$false] %s983_s27 }
  0x22   : > { %s985_s28 = scalar_lea.vmem %s984_s27, 4096  ;;  %p986_p11 = scmp.lt.s32.totalorder %s1163_s6, %s984_s27 }
  0x23   : > { %p981_p2 = pnand %p979_p0, %p965_p1  ;;  %p987_p4 = scmp.lt.s32.totalorder %s985_s28, %s978_s22 }
  0x25   : > { %p982_p12 = pneg %p981_p2  ;;  %p988_p5 = por %p987_p4, %p986_p11 }
  0x27   : > { %p989_p7 = pnand %p988_p5, %p982_p12 }
  0x29   : > { %992 = shalt.err (!%p989_p7)
}
  0x2a   : > { %s1062_s29 = smov 256   ;;  %s1063_s30 = smov 16  }
  0x2b   : > { %881 = dma.hbm_to_vmem [thread:$0]  (!%p1159_p13), %s1155_s4, 2048, %s1163_s6, %s1165_s8, %s1062_s29, %s1062_s29, %s1063_s30  }
  0x2c   : > { %p759_p9 = scmp.ge.s32.totalorder %s1059_s15, 1  ;;  %p156_p1 = scmp.lt.s32.totalorder %s1059_s15, 3 }
  0x2e   : > { %p157_p3 = pnand %p759_p9, %p156_p1 }
  0x2f   : > { %s1196_s5 = sand.u32 (!%p157_p3), 1, %s1051_s13  }
  0x30   : > { %160 = sbr.rel (%p157_p3) target bundleno = 968 (0x3c8), region = 32  ;;  %s760_s9 = sshll.u32 (!%p157_p3), %s1196_s5, 7 }
  0x31   : > { %s163_s10 = scalar_lea.sflag (!%p157_p3), [#allocation3], %s1196_s5  ;;  %s1202_s11 = scalar_lea.vmem (!%p157_p3), [#allocation2], %s760_s9 }
  0x37   : > { %1038 = dma.done.wait (%p1135_p6), %s163_s10, 2048  }
  0x38   : > { %1040 = vsyncadd (%p1135_p6), %s163_s10, 4294965248  ;;  %v1209_v0 = vld [vmem:[%s1202_s11] sm:$0xff]  ;;  %v1212_v1 = vld [vmem:[%s1202_s11 + $0x8] sm:$0xff]  ;;  %v1064_v30 = vmov 0.0|0.0   ;;  %vm1065_vm0 = vmmov 0   ;;  %v1066_v33 = vmov 0.0  }
  0x39   : > { %v1215_v2 = vld [vmem:[%s1202_s11 + $0x10] sm:$0xff]  ;;  %v231_v3 = vmax.f32 %v1209_v0, %v1212_v1  ;;  %v223_v4 = vadd.f32 %v1212_v1, %v1209_v0  ;;  %v1222_v5 = vld [vmem:[%s1202_s11 + $0x18] sm:$0xff]  ;;  %v1235_v10 = vld [vmem:[%s1202_s11 + $0x20] sm:$0xff]  ;;  %862 = vmatprep.subr.bf16.mxu0 %v1064_v30  ;;  %845 = vmatprep.mubr.msk.f32.mxu0 %vm1065_vm0, %v1066_v33  ;;  %vm279_vm1 = vcmask 7168   ;;  %vm288_vm2 = vcmask 523264   ;;  %s1067_s6 = smov 127  }
  0x3a   : > { %v232_v6 = vmax.f32 %v1215_v2, %v1222_v5  ;;  %v224_v7 = vadd.f32 %v1222_v5, %v1215_v2  ;;  %v1229_v8 = vld [vmem:[%s1202_s11 + $0x30] sm:$0xff]  ;;  %v1232_v9 = vld [vmem:[%s1202_s11 + $0x38] sm:$0xff]  ;;  %v1238_v11 = vld [vmem:[%s1202_s11 + $0x28] sm:$0xff]  ;;  %vm363_vm3 = vcmask 31744   ;;  %vm388_vm4 = vcmask 1043456   ;;  %s1337_s7 = scalar_lea.vmem [#allocation5], %s760_s9 }
  0x3b   : > { %263 = vmax.xlane.f32.xlu1 %v231_v3  ;;  %239 = vadd.xlane.f32.xlu0 %v223_v4  ;;  %v226_v12 = vadd.f32 %v1232_v9, %v1229_v8  ;;  %v225_v13 = vadd.f32 %v1238_v11, %v1235_v10  ;;  %v234_v14 = vmax.f32 %v1229_v8, %v1232_v9  ;;  %v1249_v16 = vld [vmem:[%s1202_s11 + $0x50] sm:$0xff]  ;;  %v1252_v17 = vld [vmem:[%s1202_s11 + $0x58] sm:$0xff]  ;;  %v1255_v18 = vld [vmem:[%s1202_s11 + $0x40] sm:$0xff]  ;;  %s810_s9 = sshll.u32 %s1113_s16, 11  ;;  %s680_s8 = sshll.u32 %s1337_s7, 4  ;;  %s1366_s8 = int_to_ptr.vmem [resolvable:$true] %s680_s8 }
  0x3c   : > { %v233_v15 = vmax.f32 %v1235_v10, %v1238_v11  ;;  %v1258_v19 = vld [vmem:[%s1202_s11 + $0x48] sm:$0xff]  ;;  %v228_v20 = vadd.f32 %v1252_v17, %v1249_v16  ;;  %v236_v22 = vmax.f32 %v1249_v16, %v1252_v17  ;;  %v1269_v24 = vld [vmem:[%s1202_s11 + $0x70] sm:$0xff]  ;;  %v1272_v25 = vld [vmem:[%s1202_s11 + $0x78] sm:$0xff]  ;;  %s1364_s20 = scalar_lea.hbm %s1421_s3, %s810_s9  ;;  %s667_s16 = scalar_lea.sflag [#allocation4], %s1196_s5 }
  0x3d   : > { %v227_v21 = vadd.f32 %v1258_v19, %v1255_v18  ;;  %v235_v23 = vmax.f32 %v1255_v18, %v1258_v19  ;;  %v1275_v26 = vld [vmem:[%s1202_s11 + $0x60] sm:$0xff]  ;;  %v1278_v27 = vld [vmem:[%s1202_s11 + $0x68] sm:$0xff]  ;;  %v230_v28 = vadd.f32 %v1272_v25, %v1269_v24  ;;  %v238_v31 = vmax.f32 %v1269_v24, %v1272_v25  ;;  %v197_v33 = vld [vmem:[%s1420_s2 + $0x38] sm:$0xff]  ;;  %s993_s22 = scalar_lea.vmem %s1366_s8, 2048  ;;  %p1428_p11 = scmp.ne.s32.totalorder %s1425_s24, 0 }
  0x3e   : > { %v229_v29 = vadd.f32 %v1278_v27, %v1275_v26  ;;  %v237_v32 = vmax.f32 %v1275_v26, %v1278_v27  ;;  %p994_p6 = scmp.ne.s32.totalorder %s1366_s8, %s993_s22  ;;  %s1069_s26 = smov [#allocation5]  }
  0x3f   : > { %265 = vmax.xlane.f32.xlu1 %v232_v6  ;;  %241 = vadd.xlane.f32.xlu0 %v224_v7  ;;  %s997_s27 = sshll.u32 %s1069_s26, 4  ;;  %s998_s27 = int_to_ptr.vmem [resolvable:$false] %s997_s27 }
  0x40   : > { %p995_p12 = pnand %p994_p6, %p1428_p11  ;;  %s999_s28 = scalar_lea.vmem %s998_s27, 4096 }
  0x41   : > { %p1000_p8 = scmp.lt.s32.totalorder %s1366_s8, %s998_s27  ;;  %p1001_p10 = scmp.lt.s32.totalorder %s999_s28, %s993_s22 }
  0x42   : > { %p996_p13 = pneg %p995_p12 }
  0x43   : > { %245 = vadd.xlane.f32.xlu1 %v226_v12  ;;  %243 = vadd.xlane.f32.xlu0 %v225_v13  ;;  %p1002_p0 = por %p1001_p10, %p1000_p8 }
  0x45   : > { %p1003_p2 = pnand %p1002_p0, %p996_p13 }
  0x47   : > { %269 = vmax.xlane.f32.xlu1 %v234_v14  ;;  %267 = vmax.xlane.f32.xlu0 %v233_v15  ;;  %v189_v14 = vld [vmem:[%s1419_s1] sm:$0xf] }
  0x48   : > { %v190_v15 = vld [vmem:[%s1420_s2] sm:$0xff] }
  0x49   : > { %850 = vmatprep.mubr.msk.f32.mxu1 %vm363_vm3, %v190_v15 }
  0x4b   : > { %249 = vadd.xlane.f32.xlu1 %v228_v20  ;;  %247 = vadd.xlane.f32.xlu0 %v227_v21 }
  0x4f   : > { %273 = vmax.xlane.f32.xlu1 %v236_v22  ;;  %271 = vmax.xlane.f32.xlu0 %v235_v23  ;;  %v191_v23 = vld [vmem:[%s1420_s2 + $0x8] sm:$0xff] }
  0x53   : > { %253 = vadd.xlane.f32.xlu1 %v230_v28  ;;  %251 = vadd.xlane.f32.xlu0 %v229_v29  ;;  %v192_v28 = vld [vmem:[%s1420_s2 + $0x10] sm:$0xff]  ;;  %v193_v29 = vld [vmem:[%s1420_s2 + $0x18] sm:$0xff] }
  0x57   : > { %277 = vmax.xlane.f32.xlu1 %v238_v31  ;;  %275 = vmax.xlane.f32.xlu0 %v237_v32  ;;  %v195_v31 = vld [vmem:[%s1420_s2 + $0x28] sm:$0xff]  ;;  %v196_v32 = vld [vmem:[%s1420_s2 + $0x30] sm:$0xff] }
  0xc8   : > { %v264_v34 = vpop.xlane.xlu1 %263  ;;  %v240_v35 = vpop.xlane.xlu0 %239 }
  0xc9   : > { %v255_v36 = vmul.f32 0.00390625, %v240_v35 }
  0xcb   : > { %v280_v40 = vsel %vm279_vm1, %v255_v36, %v264_v34 }
  0xcc   : > { %v266_v37 = vpop.xlane.xlu1 %265  ;;  %v242_v38 = vpop.xlane.xlu0 %241 }
  0xcd   : > { %v256_v39 = vmul.f32 0.00390625, %v242_v38 }
  0xcf   : > { %v281_v41 = vsel %vm279_vm1, %v256_v39, %v266_v37 }
  0xd0   : > { %v246_v42 = vpop.xlane.xlu1 %245  ;;  %v244_v43 = vpop.xlane.xlu0 %243  ;;  %v863_v44 = vpack.c.bf16 %v281_v41, %v280_v40 }
  0xd1   : > { %v258_v45 = vmul.f32 0.00390625, %v246_v42  ;;  %v257_v46 = vmul.f32 0.00390625, %v244_v43  ;;  %v1068_v42 = vmov 0  }
  0xd2   : > { %864 = vmatpush3.bf16.msra.mxu0 %v863_v44  ;;  %930 = vset.pattern.permute.xlu0 %v1068_v42 }
  0xd3   : > { %865 = vmatprep.subr.bf16.mxu0 %v1064_v30  ;;  %929 = vset.pattern.permute.xlu1 %v1068_v42 }
  0xd4   : > { %v270_v47 = vpop.xlane.xlu1 %269  ;;  %v268_v48 = vpop.xlane.xlu0 %267 }
  0xd5   : > { %v283_v49 = vsel %vm279_vm1, %v258_v45, %v270_v47  ;;  %v282_v50 = vsel %vm279_vm1, %v257_v46, %v268_v48 }
  0xd6   : > { %v866_v51 = vpack.c.bf16 %v283_v49, %v282_v50 }
  0xd8   : > { %v250_v52 = vpop.xlane.xlu1 %249  ;;  %867 = vmatpush3.bf16.msra.mxu0 %v866_v51  ;;  %v248_v53 = vpop.xlane.xlu0 %247 }
  0xd9   : > { %868 = vmatprep.subr.bf16.mxu0 %v1064_v30  ;;  %v260_v54 = vmul.f32 0.00390625, %v250_v52  ;;  %v259_v55 = vmul.f32 0.00390625, %v248_v53 }
  0xdc   : > { %v274_v56 = vpop.xlane.xlu1 %273  ;;  %v272_v57 = vpop.xlane.xlu0 %271 }
  0xdd   : > { %v285_v58 = vsel %vm279_vm1, %v260_v54, %v274_v56  ;;  %v284_v59 = vsel %vm279_vm1, %v259_v55, %v272_v57 }
  0xde   : > { %v869_v60 = vpack.c.bf16 %v285_v58, %v284_v59 }
  0xe0   : > { %v254_v61 = vpop.xlane.xlu1 %253  ;;  %870 = vmatpush3.bf16.msra.mxu0 %v869_v60  ;;  %v252_v62 = vpop.xlane.xlu0 %251 }
  0xe1   : > { %871 = vmatprep.subr.bf16.mxu0 %v1064_v30  ;;  %v262_v63 = vmul.f32 0.00390625, %v254_v61  ;;  %v261_v3 = vmul.f32 0.00390625, %v252_v62  ;;  %v194_v30 = vld [vmem:[%s1420_s2 + $0x20] sm:$0xff] }
  0xe4   : > { %v278_v4 = vpop.xlane.xlu1 %277  ;;  %v276_v6 = vpop.xlane.xlu0 %275 }
  0xe5   : > { %v287_v7 = vsel %vm279_vm1, %v262_v63, %v278_v4  ;;  %v286_v12 = vsel %vm279_vm1, %v261_v3, %v276_v6 }
  0xe6   : > { %v872_v13 = vpack.c.bf16 %v287_v7, %v286_v12 }
  0xe8   : > { %873 = vmatpush3.bf16.msra.mxu0 %v872_v13 }
  0xeb   : > { %846 = vmatmul.mubr.msk.f32.vlgmr.msra.gmra.mrb[0].mxu0 %vm288_vm2, %v189_v14 }
 0x1be   : > { %v358_v20 = vpop.f32.mrb[0].mxu0 }
 0x1bf   : > { %v362_v21 = vmax.f32 %v358_v20, 0.0  ;;  %v847_v22 = vpop.f32.mrb[1].mxu0 }
 0x1c1   : > { %848 = vmatprep.subr.msk.mxu1 %vm388_vm4, %v362_v21 }
 0x1c2   : > { %849 = vmatpush3.msk.msra.mxu1 %vm388_vm4, %v362_v21 }
 0x1c3   : > { %851 = vmatmul.mubr.msk.f32.vlgmr.msra.gmra.mrb[0].mxu1 %vm363_vm3, %v191_v23 }
 0x1c4   : > { %853 = vmatprep.mubr.msk.f32.mxu1 %vm363_vm3, %v192_v28 }
 0x1c7   : > { %854 = vmatmul.mubr.msk.f32.gmra.mrb[2].mxu1 %vm363_vm3, %v193_v29 }
 0x1c8   : > { %856 = vmatprep.mubr.msk.f32.mxu1 %vm363_vm3, %v194_v30 }
 0x1cb   : > { %857 = vmatmul.mubr.msk.f32.gmra.mrb[4].mxu1 %vm363_vm3, %v195_v31 }
 0x1cc   : > { %859 = vmatprep.mubr.msk.f32.mxu1 %vm363_vm3, %v196_v32 }
 0x1cf   : > { %860 = vmatmul.mubr.msk.f32.gmra.mrb[6].mxu1 %vm363_vm3, %v197_v33 }
 0x296   : > { %v852_v34 = vpop.f32.mrb[0].mxu1 }
 0x297   : > { %507 = vrot.lane.b32.xlu1 %v852_v34, %s1067_s6  ;;  %v458_v35 = vpop.f32.mrb[1].mxu1 }
 0x298   : > { %505 = vrot.lane.b32.xlu0 %v458_v35, %s1067_s6 }
 0x29a   : > { %v855_v36 = vpop.f32.mrb[2].mxu1 }
 0x29b   : > { %511 = vrot.lane.b32.xlu1 %v855_v36, %s1067_s6  ;;  %v468_v37 = vpop.f32.mrb[3].mxu1 }
 0x29e   : > { %v858_v38 = vpop.f32.mrb[4].mxu1 }
 0x29f   : > { %509 = vrot.lane.b32.xlu1 %v468_v37, %s1067_s6  ;;  %v478_v39 = vpop.f32.mrb[5].mxu1 }
 0x2a0   : > { %513 = vrot.lane.b32.xlu0 %v478_v39, %s1067_s6 }
 0x2a2   : > { %v861_v40 = vpop.f32.mrb[6].mxu1 }
 0x2a3   : > { %515 = vrot.lane.b32.xlu1 %v858_v38, %s1067_s6  ;;  %v488_v41 = vpop.f32.mrb[7].mxu1 }
 0x2a4   : > { %517 = vrot.lane.b32.xlu0 %v488_v41, %s1067_s6 }
 0x2a7   : > { %519 = vrot.lane.b32.xlu1 %v861_v40, %s1067_s6 }
 0x309   : > { %v508_v43 = vpop.permute.xlu1 %507 }
 0x30a   : > { %v530_v44 = vadd.f32 %v852_v34, %v508_v43  ;;  %v506_v45 = vpop.permute.xlu0 %505 }
 0x30b   : > { %v529_v46 = vadd.f32 %v506_v45, %v458_v35 }
 0x30c   : > { %v781_v47 = vmul.f32 -1.442695, %v530_v44 }
 0x30d   : > { %v780_v48 = vmul.f32 -1.442695, %v529_v46  ;;  %v512_v49 = vpop.permute.xlu1 %511 }
 0x30e   : > { %931 = vpow2.f32 %v781_v47  ;;  %v532_v50 = vadd.f32 %v855_v36, %v512_v49 }
 0x30f   : > { %933 = vpow2.f32 %v780_v48 }
 0x310   : > { %v783_v51 = vmul.f32 -1.442695, %v532_v50 }
 0x311   : > { %v510_v52 = vpop.permute.xlu1 %509 }
 0x312   : > { %935 = vpow2.f32 %v783_v51  ;;  %v531_v53 = vadd.f32 %v510_v52, %v468_v37  ;;  %v514_v54 = vpop.permute.xlu0 %513 }
 0x313   : > { %v533_v55 = vadd.f32 %v514_v54, %v478_v39 }
 0x314   : > { %v782_v56 = vmul.f32 -1.442695, %v531_v53 }
 0x315   : > { %v784_v57 = vmul.f32 -1.442695, %v533_v55  ;;  %v516_v58 = vpop.permute.xlu1 %515 }
 0x316   : > { %937 = vpow2.f32 %v782_v56  ;;  %v534_v59 = vadd.f32 %v858_v38, %v516_v58  ;;  %v518_v60 = vpop.permute.xlu0 %517 }
 0x317   : > { %939 = vpow2.f32 %v784_v57  ;;  %v535_v61 = vadd.f32 %v518_v60, %v488_v41 }
 0x318   : > { %v932_v62 = vpop.eup %931  ;;  %v785_v63 = vmul.f32 -1.442695, %v534_v59 }
 0x319   : > { %v934_v3 = vpop.eup %933  ;;  %v562_v4 = vadd.f32 1.0, %v932_v62  ;;  %v786_v6 = vmul.f32 -1.442695, %v535_v61  ;;  %v520_v7 = vpop.permute.xlu1 %519 }
 0x31a   : > { %v561_v12 = vadd.f32 1.0, %v934_v3  ;;  %941 = vpow2.f32 %v785_v63  ;;  %v536_v13 = vadd.f32 %v861_v40, %v520_v7 }
 0x31b   : > { %943 = vrcp.f32 %v562_v4 }
 0x31c   : > { %v936_v14 = vpop.eup %935  ;;  %945 = vrcp.f32 %v561_v12  ;;  %v787_v15 = vmul.f32 -1.442695, %v536_v13 }
 0x31d   : > { %v564_v20 = vadd.f32 1.0, %v936_v14  ;;  %947 = vpow2.f32 %v786_v6 }
 0x31e   : > { %949 = vpow2.f32 %v787_v15 }
 0x31f   : > { %951 = vrcp.f32 %v564_v20 }
 0x320   : > { %v938_v21 = vpop.eup %937 }
 0x321   : > { %v940_v22 = vpop.eup %939  ;;  %v563_v23 = vadd.f32 1.0, %v938_v21 }
 0x322   : > { %v565_v28 = vadd.f32 1.0, %v940_v22 }
 0x323   : > { %953 = vrcp.f32 %v563_v23 }
 0x324   : > { %v942_v29 = vpop.eup %941  ;;  %955 = vrcp.f32 %v565_v28 }
 0x325   : > { %v944_v30 = vpop.eup %943  ;;  %v566_v31 = vadd.f32 1.0, %v942_v29 }
 0x326   : > { %v946_v32 = vpop.eup %945  ;;  %592 = vperm.xlu1 %929, %v944_v30  }
 0x327   : > { %v948_v33 = vpop.eup %947  ;;  %957 = vrcp.f32 %v566_v31  ;;  %587 = vperm.xlu0 %930, %v946_v32  }
 0x328   : > { %v950_v34 = vpop.eup %949  ;;  %v567_v35 = vadd.f32 1.0, %v948_v33 }
 0x329   : > { %v952_v36 = vpop.eup %951  ;;  %v568_v37 = vadd.f32 1.0, %v950_v34 }
 0x32a   : > { %959 = vrcp.f32 %v567_v35 }
 0x32b   : > { %961 = vrcp.f32 %v568_v37  ;;  %602 = vperm.xlu0 %930, %v952_v36  }
 0x32d   : > { %v954_v38 = vpop.eup %953 }
 0x32e   : > { %597 = vperm.xlu1 %929, %v954_v38   ;;  %v956_v39 = vpop.eup %955 }
 0x331   : > { %v958_v40 = vpop.eup %957 }
 0x332   : > { %607 = vperm.xlu1 %929, %v956_v39   ;;  %612 = vperm.xlu0 %930, %v958_v40  }
 0x334   : > { %v960_v41 = vpop.eup %959 }
 0x335   : > { %v962_v42 = vpop.eup %961 }
 0x336   : > { %622 = vperm.xlu0 %930, %v962_v42   ;;  %617 = vperm.xlu1 %929, %v960_v41  }
 0x3a5   : > { %v593_v43 = vpop.permute.xlu1 %592 }
 0x3a6   : > { %v626_v44 = vmul.f32 %v593_v43, %v1215_v2  ;;  %v650_v45 = vmul.f32 %v1222_v5, %v593_v43  ;;  %v588_v46 = vpop.permute.xlu0 %587 }
 0x3a7   : > { %v625_v47 = vmul.f32 %v588_v46, %v1209_v0  ;;  %v649_v48 = vmul.f32 %v1212_v1, %v588_v46 }
 0x3a8   : > { %634 = vst [vmem:[%s1337_s7 + $0x10] sm:$0xff] %v626_v44  ;;  %797 = vst [vmem:[%s1337_s7 + $0x18] sm:$0xff] %v650_v45 }
 0x3a9   : > { %633 = vst [vmem:[%s1337_s7] sm:$0xff] %v625_v47  ;;  %796 = vst [vmem:[%s1337_s7 + $0x8] sm:$0xff] %v649_v48 }
 0x3aa   : > { %v603_v2 = vpop.permute.xlu0 %602 }
 0x3ab   : > { %v628_v0 = vmul.f32 %v603_v2, %v1229_v8  ;;  %v652_v1 = vmul.f32 %v1232_v9, %v603_v2 }
 0x3ad   : > { %636 = vst [vmem:[%s1337_s7 + $0x30] sm:$0xff] %v628_v0  ;;  %799 = vst [vmem:[%s1337_s7 + $0x38] sm:$0xff] %v652_v1  ;;  %v598_v5 = vpop.permute.xlu1 %597 }
 0x3ae   : > { %v627_v49 = vmul.f32 %v598_v5, %v1235_v10  ;;  %v651_v50 = vmul.f32 %v1238_v11, %v598_v5 }
 0x3b0   : > { %635 = vst [vmem:[%s1337_s7 + $0x20] sm:$0xff] %v627_v49  ;;  %798 = vst [vmem:[%s1337_s7 + $0x28] sm:$0xff] %v651_v50 }
 0x3b1   : > { %v608_v51 = vpop.permute.xlu1 %607  ;;  %v613_v52 = vpop.permute.xlu0 %612 }
 0x3b2   : > { %v629_v8 = vmul.f32 %v608_v51, %v1255_v18  ;;  %v653_v53 = vmul.f32 %v1258_v19, %v608_v51  ;;  %v630_v9 = vmul.f32 %v613_v52, %v1249_v16  ;;  %v654_v54 = vmul.f32 %v1252_v17, %v613_v52 }
 0x3b4   : > { %637 = vst [vmem:[%s1337_s7 + $0x40] sm:$0xff] %v629_v8  ;;  %800 = vst [vmem:[%s1337_s7 + $0x48] sm:$0xff] %v653_v53 }
 0x3b5   : > { %638 = vst [vmem:[%s1337_s7 + $0x50] sm:$0xff] %v630_v9  ;;  %801 = vst [vmem:[%s1337_s7 + $0x58] sm:$0xff] %v654_v54  ;;  %v618_v10 = vpop.permute.xlu1 %617  ;;  %v623_v11 = vpop.permute.xlu0 %622 }
 0x3b6   : > { %v631_v16 = vmul.f32 %v618_v10, %v1275_v26  ;;  %v655_v17 = vmul.f32 %v1278_v27, %v618_v10  ;;  %v632_v18 = vmul.f32 %v623_v11, %v1269_v24  ;;  %v656_v19 = vmul.f32 %v1272_v25, %v623_v11 }
 0x3b8   : > { %639 = vst [vmem:[%s1337_s7 + $0x60] sm:$0xff] %v631_v16  ;;  %802 = vst [vmem:[%s1337_s7 + $0x68] sm:$0xff] %v655_v17 }
 0x3b9   : > { %640 = vst [vmem:[%s1337_s7 + $0x70] sm:$0xff] %v632_v18  ;;  %803 = vst [vmem:[%s1337_s7 + $0x78] sm:$0xff] %v656_v19 }
 0x3ba   : > { %1006 = shalt.err (!%p1003_p2)
}
 0x3bb   : > { %s1007_s29 = scalar_lea.hbm %s1364_s20, 2048  ;;  %s1011_s11 = scalar_lea.hbm %s1421_s3, 4096 }
 0x3bc   : > { %p1008_p4 = scmp.ne.s32.totalorder %s1364_s20, %s1007_s29  ;;  %p1012_p9 = scmp.lt.u32.totalorder %s1364_s20, %s1421_s3 }
 0x3bd   : > { %p1013_p1 = scmp.lt.u32.totalorder %s1011_s11, %s1007_s29  ;;  %p1015_p6 = scmp.lt.u32.totalorder %s1007_s29, %s1364_s20 }
 0x3be   : > { %p1009_p5 = pnand %p1008_p4, %p1428_p11 }
 0x3bf   : > { %p1014_p3 = por %p1013_p1, %p1012_p9 }
 0x3c0   : > { %p1010_p7 = pneg %p1009_p5 }
 0x3c1   : > { %p1016_p12 = por %p1015_p6, %p1014_p3 }
 0x3c3   : > { %p1017_p13 = pnand %p1016_p12, %p1010_p7 }
 0x3c5   : > { %1020 = shalt.err (!%p1017_p13)
}
 0x3c6   : > { %s1070_s6 = smov 256   ;;  %s1071_s7 = smov 16  }
 0x3c7   : > { %876 = dma.vmem_to_hbm [thread:$0]  (%p1428_p11), %s1366_s8, 2048, %s1364_s20, %s667_s16, %s1070_s6, %s1070_s6, %s1071_s7  }
 0x3c8 PF: > { %s695_s9 = sand.u32 1, %s1047_s12   ;;  %p1429_p8 = scmp.ne.s32.totalorder %s1426_s25, 0 }
 0x3c9   : > { %p1430_p10 = scmp.ge.s32.totalorder %s1059_s15, 2  ;;  %s696_s17 = scalar_lea.sflag [#allocation4], %s695_s9 }
 0x3cb   : > { %p883_p0 = pnand %p1430_p10, %p1429_p8 }
 0x3cd   : > { %1042 = dma.done.wait (!%p883_p0), %s696_s17, 2048  }
 0x3ce   : > { %1044 = vsyncadd (!%p883_p0), %s696_s17, 4294965248  ;;  %p16_p2 = scmp.ge.s32.totalorder %s1117_s18, 4   ;;  %s1431_s12 = smov %s1051_s13 }
 0x3cf   : > { %s1432_s13 = smov %s1055_s14  ;;  %s1433_s14 = smov %s1129_s21 }
 0x3d0   : > { %s1434_s15 = smov %s1117_s18  ;;  %18 = sbr.rel (!%p16_p2) target bundleno = 5 (0x5), region = 79 }
 0x3d7   :  { %701 = vsyncpa [#allocation3], 1 }
 0x3d8   :  { %703 = vsyncpa [#allocation3 + $0x1], 1 }
 0x3d9   :  { %704 = vsyncpa [#allocation4], 1 }
 0x3da   :  { %706 = vsyncpa [#allocation4 + $0x1], 1 }

</bundles_post_ra>
